<compile_context>
chip_gen: v7x
topology: tpu7x:2x2x1
jax: 0.10.0
libtpu: 0.0.40
codegen_flags: <defaults>
</compile_context>

<pallas_src>
import math
import jax
import jax.numpy as jnp
from jax import lax
from jax.experimental import pallas as pl
from jax.experimental.pallas import tpu as pltpu


def _round_up(x, m):
    return ((x + m - 1) // m) * m


def critic_kernel(s_ref, a_ref, w1_ref, b1_ref, w2_ref, b2_ref, w3_ref,
                  b3_ref, out_ref):
    in_dim = s_ref.shape[1]

    # fc1 over the implicit concat [state | action]: two MXU dots against
    # static slices of the resident W1 block (numerically identical to
    # torch.cat + Linear).  The K=4 action dot is free; the MXU is idle here.
    h1 = (jnp.dot(s_ref[...], w1_ref[:in_dim, :],
                  preferred_element_type=jnp.float32)
          + jnp.dot(a_ref[...], w1_ref[in_dim:, :],
                    preferred_element_type=jnp.float32)
          + b1_ref[...])
    h1 = jnp.maximum(h1, 0.0)  # relu (VPU)

    # fc2
    h2 = jnp.dot(h1, w2_ref[...],
                 preferred_element_type=jnp.float32) + b2_ref[...]
    h2 = jnp.maximum(h2, 0.0)  # relu (VPU)

    # output_layer (hidden -> 1): contract over H with the (1, H) weight row so
    # the result is produced directly in lane-dense (1, TILE_B) layout
    # (no (TILE_B,) sublane vector -> lane row relayout on the XLU).
    q = lax.dot_general(w3_ref[...], h2,
                        dimension_numbers=(((1,), (1,)), ((), ())),
                        preferred_element_type=jnp.float32)  # (1, TILE_B)
    out_ref[...] = (q + b3_ref[0, 0]).astype(out_ref.dtype)


def critic_forward(state, action, params, *, tile_b=None):
    """state: [B, input_dim], action: [B, action_dim] -> [B, 1] (float32)."""
    w1, b1, w2, b2, w3, b3 = params
    state = state.astype(jnp.float32)
    action = action.astype(jnp.float32)

    B, in_dim = state.shape
    act_dim = action.shape[1]
    F, H = w1.shape
    assert F == in_dim + act_dim, "w1 must be [(input_dim+action_dim), hidden]"

    # Batch-tile heuristic:
    #   * B <= 1024:  one full tile -> grid=(1,), no pipeline overhead at all.
    #   * B  > 1024:  at least 2 steps (so v7x's two TCs can split the
    #     "parallel" axis), capped at 8192 rows/step (~3.5 MB VMEM/step, well
    #     under every generation's default scoped-VMEM limit).
    if tile_b is None:
        b128 = _round_up(max(B, 1), 128)
        if b128 <= 1024:
            tile_b = b128
        else:
            tile_b = min(8192, _round_up(pl.cdiv(B, 2), 128))
    grid_b = pl.cdiv(B, tile_b)
    b_pad = grid_b * tile_b  # output slab padded -> always full (1, tile_b) stores

    out = pl.pallas_call(
        critic_kernel,
        out_shape=jax.ShapeDtypeStruct((1, b_pad), jnp.float32),
        grid=(grid_b,),
        in_specs=[
            # Activation tiles: streamed / double-buffered across the batch
            # grid. The last tile may be partial; out-of-range rows are
            # undefined but never mix into valid rows (no batch contraction).
            pl.BlockSpec((tile_b, in_dim), lambda i: (i, 0)),   # state
            pl.BlockSpec((tile_b, act_dim), lambda i: (i, 0)),  # action
            # Weights & biases: full-extent blocks with constant index maps ->
            # DMA'd once, VMEM-resident for the whole grid (< 10 KB total).
            pl.BlockSpec((F, H), lambda i: (0, 0)),             # w1 [F, H]
            pl.BlockSpec((1, H), lambda i: (0, 0)),             # b1 [1, H]
            pl.BlockSpec((H, H), lambda i: (0, 0)),             # w2 [H, H]
            pl.BlockSpec((1, H), lambda i: (0, 0)),             # b2 [1, H]
            pl.BlockSpec((1, H), lambda i: (0, 0)),             # w3 [1, H]
            # Scalar output bias lives in SMEM (avoids a padded (8,128) VMEM
            # tile for a [1,1] array and a trailing XLA add in the wrapper).
            pl.BlockSpec(memory_space=pltpu.MemorySpace.SMEM),  # b3 [1, 1]
        ],
        # Lane-dense output slab: each grid step writes one full (1, TILE_B)
        # row chunk (unmasked vst).
        out_specs=pl.BlockSpec((1, tile_b), lambda i: (0, i)),
        compiler_params=pltpu.CompilerParams(
            dimension_semantics=("parallel",),
        ),
    )(state, action, w1, b1, w2, b2, w3, b3)

    # Back to [B, 1]; pad lanes (from b_pad) are sliced off here.
    return out[0, :B, None]


def xavier_uniform(key, out_features, in_features):
    """Matches nn.init.xavier_uniform_ on an (out, in) Linear weight."""
    bound = math.sqrt(6.0 / (in_features + out_features))
    return jax.random.uniform(key, (out_features, in_features),
                              minval=-bound, maxval=bound, dtype=jnp.float32)


def init_params(key, input_dim, action_dim, hidden_dim):
    """Kernel-layout params matching CriticNetwork.init_weights().

    PyTorch Linear weights are (out, in); the kernel wants (in, out), so the
    xavier-initialized weights are transposed.  Biases are zero.
    """
    k1, k2, k3 = jax.random.split(key, 3)
    w1 = xavier_uniform(k1, hidden_dim, input_dim + action_dim)  # fc1
    w2 = xavier_uniform(k2, hidden_dim, hidden_dim)              # fc2
    w3 = xavier_uniform(k3, 1, hidden_dim)                       # output_layer
    b1 = jnp.zeros((1, hidden_dim), jnp.float32)
    b2 = jnp.zeros((1, hidden_dim), jnp.float32)
    b3 = jnp.zeros((1, 1), jnp.float32)
    # w3 is kept as a [1, hidden] row (contracted against h2 in the kernel).
    return (w1.T, b1, w2.T, b2, w3, b3)


def critic_reference(state, action, params):
    """Plain-JAX reference of the PyTorch forward for validation."""
    w1, b1, w2, b2, w3, b3 = params
    x = jnp.concatenate([state, action], axis=1)
    h1 = jnp.maximum(x @ w1 + b1, 0.0)
    h2 = jnp.maximum(h1 @ w2 + b2, 0.0)
    return h2 @ w3.T + b3


if __name__ == "__main__":
    input_dim, action_dim, hidden_dim, batch = 16, 4, 32, 2

    key = jax.random.PRNGKey(0)
    kp, ks, ka = jax.random.split(key, 3)
    params = init_params(kp, input_dim, action_dim, hidden_dim)

    state = jax.random.normal(ks, (batch, input_dim), dtype=jnp.float32)
    action = jax.random.normal(ka, (batch, action_dim), dtype=jnp.float32)

    out = critic_forward(state, action, params)
    jax.block_until_ready(out)
    ref = critic_reference(state, action, params)
    assert out.shape == (batch, 1)
    assert jnp.allclose(out, ref, atol=1e-5, rtol=1e-5)

    # Also exercise the multi-step grid with a partial last batch tile.
    b2_batch = 300
    ks2, ka2 = jax.random.split(jax.random.PRNGKey(1), 2)
    state2 = jax.random.normal(ks2, (b2_batch, input_dim), dtype=jnp.float32)
    action2 = jax.random.normal(ka2, (b2_batch, action_dim), dtype=jnp.float32)
    out2 = critic_forward(state2, action2, params, tile_b=128)  # grid=(3,)
    jax.block_until_ready(out2)
    ref2 = critic_reference(state2, action2, params)
    assert out2.shape == (b2_batch, 1)
    assert jnp.allclose(out2, ref2, atol=1e-5, rtol=1e-5)

    print("KERNEL_OK")
</pallas_src>

<mosaic_0001>
module attributes {stable_mosaic.version = 11 : i64} {
  func.func @critic_kernel(%arg0: i32, %arg1: memref<128x16xf32, #tpu.memory_space<vmem>>, %arg2: memref<128x4xf32, #tpu.memory_space<vmem>>, %arg3: memref<20x32xf32, #tpu.memory_space<vmem>>, %arg4: memref<1x32xf32, #tpu.memory_space<vmem>>, %arg5: memref<32x32xf32, #tpu.memory_space<vmem>>, %arg6: memref<1x32xf32, #tpu.memory_space<vmem>>, %arg7: memref<1x32xf32, #tpu.memory_space<vmem>>, %arg8: memref<1x1xf32, #tpu.memory_space<smem>>, %arg9: memref<1x128xf32, #tpu.memory_space<vmem>>) attributes {dimension_semantics = [#tpu.dimension_semantics<parallel>], iteration_bounds = array<i64: 1>, scalar_prefetch = 0 : i64, scratch_operands = 0 : i64, tpu.core_type = #tpu.core_type<tc>, window_params = [{transform_indices = @transform_0, window_bounds = array<i64: 128, 16>}, {transform_indices = @transform_1, window_bounds = array<i64: 128, 4>}, {pipeline_mode = #tpu.pipeline_mode<synchronous>, transform_indices = @transform_2, window_bounds = array<i64: 20, 32>}, {pipeline_mode = #tpu.pipeline_mode<synchronous>, transform_indices = @transform_3, window_bounds = array<i64: 1, 32>}, {pipeline_mode = #tpu.pipeline_mode<synchronous>, transform_indices = @transform_4, window_bounds = array<i64: 32, 32>}, {pipeline_mode = #tpu.pipeline_mode<synchronous>, transform_indices = @transform_5, window_bounds = array<i64: 1, 32>}, {pipeline_mode = #tpu.pipeline_mode<synchronous>, transform_indices = @transform_6, window_bounds = array<i64: 1, 32>}, {transform_indices = @transform_7, window_bounds = array<i64: 1, 1>}, {transform_indices = @transform_8, window_bounds = array<i64: 1, 128>}]} {
    %c0 = arith.constant 0 : index
    %c0_0 = arith.constant 0 : index
    %0 = vector.load %arg1[%c0, %c0_0] : memref<128x16xf32, #tpu.memory_space<vmem>>, vector<128x16xf32>
    %c0_1 = arith.constant 0 : index
    %c0_2 = arith.constant 0 : index
    %1 = vector.load %arg3[%c0_1, %c0_2] : memref<20x32xf32, #tpu.memory_space<vmem>>, vector<16x32xf32>
    %cst = arith.constant dense<0.000000e+00> : vector<128x32xf32>
    %2 = tpu.matmul %0, %1, %cst {dimension_numbers = #tpu.dot_dimension_numbers<[1], [0], [0], [1], [0, 0, 1, 1], [], []>} : vector<128x16xf32>, vector<16x32xf32>, vector<128x32xf32> -> vector<128x32xf32>
    %c0_3 = arith.constant 0 : index
    %c0_4 = arith.constant 0 : index
    %3 = vector.load %arg2[%c0_3, %c0_4] : memref<128x4xf32, #tpu.memory_space<vmem>>, vector<128x4xf32>
    %c16 = arith.constant 16 : index
    %c0_5 = arith.constant 0 : index
    %4 = vector.load %arg3[%c16, %c0_5] : memref<20x32xf32, #tpu.memory_space<vmem>>, vector<4x32xf32>
    %cst_6 = arith.constant dense<0.000000e+00> : vector<128x32xf32>
    %5 = tpu.matmul %3, %4, %cst_6 {dimension_numbers = #tpu.dot_dimension_numbers<[1], [0], [0], [1], [0, 0, 1, 1], [], []>} : vector<128x4xf32>, vector<4x32xf32>, vector<128x32xf32> -> vector<128x32xf32>
    %6 = arith.addf %2, %5 : vector<128x32xf32>
    %c0_7 = arith.constant 0 : index
    %c0_8 = arith.constant 0 : index
    %7 = vector.load %arg4[%c0_7, %c0_8] : memref<1x32xf32, #tpu.memory_space<vmem>>, vector<1x32xf32>
    %8 = vector.broadcast %7 : vector<1x32xf32> to vector<128x32xf32>
    %9 = arith.addf %6, %8 : vector<128x32xf32>
    %cst_9 = arith.constant 0.000000e+00 : f32
    %10 = vector.broadcast %cst_9 : f32 to vector<128x32xf32>
    %11 = arith.maximumf %9, %10 : vector<128x32xf32>
    %c0_10 = arith.constant 0 : index
    %c0_11 = arith.constant 0 : index
    %12 = vector.load %arg5[%c0_10, %c0_11] : memref<32x32xf32, #tpu.memory_space<vmem>>, vector<32x32xf32>
    %cst_12 = arith.constant dense<0.000000e+00> : vector<128x32xf32>
    %13 = tpu.matmul %11, %12, %cst_12 {dimension_numbers = #tpu.dot_dimension_numbers<[1], [0], [0], [1], [0, 0, 1, 1], [], []>} : vector<128x32xf32>, vector<32x32xf32>, vector<128x32xf32> -> vector<128x32xf32>
    %c0_13 = arith.constant 0 : index
    %c0_14 = arith.constant 0 : index
    %14 = vector.load %arg6[%c0_13, %c0_14] : memref<1x32xf32, #tpu.memory_space<vmem>>, vector<1x32xf32>
    %15 = vector.broadcast %14 : vector<1x32xf32> to vector<128x32xf32>
    %16 = arith.addf %13, %15 : vector<128x32xf32>
    %cst_15 = arith.constant 0.000000e+00 : f32
    %17 = vector.broadcast %cst_15 : f32 to vector<128x32xf32>
    %18 = arith.maximumf %16, %17 : vector<128x32xf32>
    %c0_16 = arith.constant 0 : index
    %c0_17 = arith.constant 0 : index
    %19 = vector.load %arg7[%c0_16, %c0_17] : memref<1x32xf32, #tpu.memory_space<vmem>>, vector<1x32xf32>
    %cst_18 = arith.constant dense<0.000000e+00> : vector<1x128xf32>
    %20 = tpu.matmul %19, %18, %cst_18 {dimension_numbers = #tpu.dot_dimension_numbers<[1], [1], [0], [0], [0, 0, 1, 0], [], []>} : vector<1x32xf32>, vector<128x32xf32>, vector<1x128xf32> -> vector<1x128xf32>
    %c0_19 = arith.constant 0 : index
    %c0_20 = arith.constant 0 : index
    %21 = memref.load %arg8[%c0_19, %c0_20] : memref<1x1xf32, #tpu.memory_space<smem>>
    %22 = vector.broadcast %21 : f32 to vector<1x128xf32>
    %23 = arith.addf %20, %22 : vector<1x128xf32>
    %c0_21 = arith.constant 0 : index
    %c0_22 = arith.constant 0 : index
    %24 = vector.load %arg9[%c0_21, %c0_22] : memref<1x128xf32, #tpu.memory_space<vmem>>, vector<1x128xf32>
    tpu.vector_store %arg9[%c0_21, %c0_22], %23 {strides = array<i32>} : memref<1x128xf32, #tpu.memory_space<vmem>>, vector<1x128xf32>,
    return
  }
  func.func @transform_0(%arg0: i32) -> (i32, i32) {
    %c0_i32 = arith.constant 0 : i32
    %c0_i32_0 = arith.constant 0 : i32
    return %arg0, %c0_i32 : i32, i32
  }
  func.func @transform_1(%arg0: i32) -> (i32, i32) {
    %c0_i32 = arith.constant 0 : i32
    %c0_i32_0 = arith.constant 0 : i32
    return %arg0, %c0_i32 : i32, i32
  }
  func.func @transform_2(%arg0: i32) -> (i32, i32) {
    %c0_i32 = arith.constant 0 : i32
    %c0_i32_0 = arith.constant 0 : i32
    %c0_i32_1 = arith.constant 0 : i32
    return %c0_i32, %c0_i32_0 : i32, i32
  }
  func.func @transform_3(%arg0: i32) -> (i32, i32) {
    %c0_i32 = arith.constant 0 : i32
    %c0_i32_0 = arith.constant 0 : i32
    %c0_i32_1 = arith.constant 0 : i32
    return %c0_i32, %c0_i32_0 : i32, i32
  }
  func.func @transform_4(%arg0: i32) -> (i32, i32) {
    %c0_i32 = arith.constant 0 : i32
    %c0_i32_0 = arith.constant 0 : i32
    %c0_i32_1 = arith.constant 0 : i32
    return %c0_i32, %c0_i32_0 : i32, i32
  }
  func.func @transform_5(%arg0: i32) -> (i32, i32) {
    %c0_i32 = arith.constant 0 : i32
    %c0_i32_0 = arith.constant 0 : i32
    %c0_i32_1 = arith.constant 0 : i32
    return %c0_i32, %c0_i32_0 : i32, i32
  }
  func.func @transform_6(%arg0: i32) -> (i32, i32) {
    %c0_i32 = arith.constant 0 : i32
    %c0_i32_0 = arith.constant 0 : i32
    %c0_i32_1 = arith.constant 0 : i32
    return %c0_i32, %c0_i32_0 : i32, i32
  }
  func.func @transform_7(%arg0: i32) -> (i32, i32) {
    %c0_i32 = arith.constant 0 : i32
    %c0_i32_0 = arith.constant 0 : i32
    %c0_i32_1 = arith.constant 0 : i32
    return %c0_i32, %c0_i32_0 : i32, i32
  }
  func.func @transform_8(%arg0: i32) -> (i32, i32) {
    %c0_i32 = arith.constant 0 : i32
    %c0_i32_0 = arith.constant 0 : i32
    return %c0_i32, %arg0 : i32, i32
  }
}

</mosaic_0001>

<bundles_post_ra>
// kernel: tpu_custom_call.1
= control target key start
LH: loop header
LB: loop body
LE: loop exit
PB: predicated region body
PF: predicated region fallthrough
CT: control target
= control target key end

     0   :  { %14 = vsyncpa [#allocation4], 0  ;;  %s1564_s0 = inlined_call_operand.vmem [shape: f32[2,16], index: 0, kind: input, shape index: {}]   ;;  %s1565_s1 = inlined_call_operand.vmem [shape: f32[2,4], index: 1, kind: input, shape index: {}]   ;;  %s1566_s2 = inlined_call_operand.hbm [shape: f32[20,32], index: 2, kind: input, shape index: {}]   ;;  %s1567_s3 = inlined_call_operand.vmem [shape: f32[1,32], index: 3, kind: input, shape index: {}]   ;;  %s1568_s4 = inlined_call_operand.hbm [shape: f32[32,32], index: 4, kind: input, shape index: {}]   ;;  %s1569_s5 = inlined_call_operand.vmem [shape: f32[1,32], index: 5, kind: input, shape index: {}]   ;;  %s1570_s6 = inlined_call_operand.vmem [shape: f32[1,32], index: 6, kind: input, shape index: {}]   ;;  %s1571_s7 = inlined_call_operand.<no memory space> [shape: f32[1,1], index: 7, kind: input, shape index: {}]   ;;  %s1572_s8 = inlined_call_operand.hbm [shape: f32[1,128], index: 8, kind: output, shape index: {}]  }
   0x1   :  { %15 = vsyncpa [#allocation7], 0 }
   0x2   :  { %16 = vsyncpa [#allocation5], 0  ;;  %s1288_s27 = smov [#allocation3]   ;;  %s1216_s9 = scalar_lea.hbm %s1566_s2, 384 }
   0x3   :  { %s26_s28 = sshll.u32 %s1288_s27, 4  ;;  %p1217_p0 = scmp.ne.s32.totalorder %s1566_s2, %s1216_s9  ;;  %s27_s28 = int_to_ptr.vmem [resolvable:$true] %s26_s28 }
   0x4   :  { %p1220_p1 = scmp.lt.u32.totalorder %s1216_s9, %s1566_s2 }
   0x6   :  { %p1222_p2 = pnand %p1220_p1, %p1217_p0 }
   0x8   :  { %1225 = shalt.err (!%p1222_p2)
}
   0x9   :  { %s1226_s14 = scalar_lea.vmem %s27_s28, 384  ;;  %p1231_p4 = scmp.lt.s32.totalorder %s27_s28, %s27_s28 }
   0xa   :  { %p1227_p3 = scmp.ne.s32.totalorder %s27_s28, %s1226_s14  ;;  %p1232_p5 = scmp.lt.s32.totalorder %s1226_s14, %s1226_s14 }
   0xc   :  { %p1233_p6 = por %p1232_p5, %p1231_p4 }
   0xe   :  { %p1234_p7 = pnand %p1233_p6, %p1227_p3 }
  0x10   :  { %1237 = shalt.err (!%p1234_p7)
}
  0x11   :  { %s1289_s15 = smov 128   ;;  %s1290_s16 = smov 8  }
  0x12   :  { %32 = dma.hbm_to_vmem [thread:$0]  %s1566_s2, 384, %s27_s28, [#allocation4], %s1289_s15, %s1289_s15, %s1290_s16  }
  0x13   :  { %s1291_s19 = smov [#allocation6]   ;;  %s1238_s23 = scalar_lea.hbm %s1568_s4, 512 }
  0x14   :  { %s40_s20 = sshll.u32 %s1291_s19, 4  ;;  %p1239_p8 = scmp.ne.s32.totalorder %s1568_s4, %s1238_s23  ;;  %s41_s20 = int_to_ptr.vmem [resolvable:$true] %s40_s20 }
  0x15   :  { %p1242_p9 = scmp.lt.u32.totalorder %s1238_s23, %s1568_s4 }
  0x17   :  { %p1244_p10 = pnand %p1242_p9, %p1239_p8 }
  0x19   :  { %1247 = shalt.err (!%p1244_p10)
}
  0x1a   :  { %s1248_s29 = scalar_lea.vmem %s41_s20, 512  ;;  %p1253_p12 = scmp.lt.s32.totalorder %s41_s20, %s41_s20 }
  0x1b   :  { %p1249_p11 = scmp.ne.s32.totalorder %s41_s20, %s1248_s29  ;;  %p1254_p13 = scmp.lt.s32.totalorder %s1248_s29, %s1248_s29 }
  0x1d   :  { %p1255_p0 = por %p1254_p13, %p1253_p12 }
  0x1f   :  { %p1256_p1 = pnand %p1255_p0, %p1249_p11 }
  0x21   :  { %1259 = shalt.err (!%p1256_p1)
}
  0x22   :  { %46 = dma.hbm_to_vmem [thread:$0]  %s1568_s4, 512, %s41_s20, [#allocation7], %s1289_s15, %s1289_s15, %s1290_s16  }
  0x23   :  { %1282 = dma.done.wait [#allocation4], 384  }
  0x24   :  { %1283 = vsyncadd [#allocation4], 4294966912 }
  0x25   :  { %1284 = dma.done.wait [#allocation7], 512  }
  0x26   :  { %1285 = vsyncadd [#allocation7], 4294966784  ;;  %vm143_vm0 = vcmask 1043456   ;;  %vm94_vm1 = vcmask 31744   ;;  %v93_v0 = vld [vmem:[#allocation3 + $0x10] sm:$0xf] }
  0x27   :  { %v77_v1 = vld [vmem:[%s1565_s1] sm:$0xff]  ;;  %v78_v2 = vld [vmem:[%s1565_s1 + $0x8] sm:$0xff]  ;;  %1027 = vmatprep.subr.msk.mxu0 %vm143_vm0, %v93_v0  ;;  %v79_v5 = vld [vmem:[%s1565_s1 + $0x10] sm:$0xff]  ;;  %vm292_vm2 = vcmask 130048   ;;  %vm536_vm3 = vcmask 261120   ;;  %vm1293_vm4 = vmmov 0  }
  0x28   :  { %1029 = vmatprep.mubr.msk.f32.mxu0 %vm94_vm1, %v77_v1  ;;  %v75_v3 = vld [vmem:[#allocation3] sm:$0xff]  ;;  %v76_v4 = vld [vmem:[#allocation3 + $0x8] sm:$0xff]  ;;  %1028 = vmatpush3.msk.msra.mxu0 %vm143_vm0, %v93_v0  ;;  %v80_v7 = vld [vmem:[%s1565_s1 + $0x18] sm:$0xff]  ;;  %s1295_s26 = smov [#allocation8]  }
  0x29   :  { %v1148_v6 = vpack.c.bf16 %v76_v4, %v75_v3  ;;  %1030 = vmatmul.mubr.msk.f32.vlgmr.msra.gmra.mrb[0].mxu0 %vm94_vm1, %v78_v2  ;;  %v81_v8 = vld [vmem:[%s1565_s1 + $0x20] sm:$0xff]  ;;  %v82_v9 = vld [vmem:[%s1565_s1 + $0x28] sm:$0xff]  ;;  %v83_v10 = vld [vmem:[%s1565_s1 + $0x30] sm:$0xff]  ;;  %s877_s27 = sshll.u32 %s1295_s26, 4  ;;  %s878_s27 = int_to_ptr.vmem [resolvable:$true] %s877_s27 }
  0x2a   :  { %1032 = vmatprep.mubr.msk.f32.mxu0 %vm94_vm1, %v79_v5  ;;  %v525_v11 = vld [vmem:[#allocation6] sm:$0xff]  ;;  %v526_v13 = vld [vmem:[#allocation6 + $0x8] sm:$0xff]  ;;  %v86_v16 = vld [vmem:[%s1565_s1 + $0x48] sm:$0xff]  ;;  %s1260_s29 = scalar_lea.vmem %s878_s27, 16  ;;  %s1264_s2 = scalar_lea.vmem %s878_s27, 32 }
  0x2b   :  { %1149 = vmatprep.subr.bf16.mxu0 %v1148_v6  ;;  %v84_v12 = vld [vmem:[%s1565_s1 + $0x38] sm:$0xff]  ;;  %v85_v14 = vld [vmem:[%s1565_s1 + $0x40] sm:$0xff]  ;;  %v1152_v15 = vpack.c.bf16 %v526_v13, %v525_v11  ;;  %v87_v17 = vld [vmem:[%s1565_s1 + $0x50] sm:$0xff]  ;;  %p1261_p2 = scmp.ne.s32.totalorder %s878_s27, %s1260_s29  ;;  %p1265_p3 = scmp.lt.s32.totalorder %s878_s27, %s878_s27 }
  0x2c   :  { %1151 = vmatpush3.bf16.msra.mxu0 %v1148_v6  ;;  %v88_v18 = vld [vmem:[%s1565_s1 + $0x58] sm:$0xff]  ;;  %v89_v19 = vld [vmem:[%s1565_s1 + $0x60] sm:$0xff]  ;;  %v90_v20 = vld [vmem:[%s1565_s1 + $0x68] sm:$0xff]  ;;  %p1266_p4 = scmp.lt.s32.totalorder %s1264_s2, %s1260_s29 }
  0x2d   :  { %1033 = vmatmul.mubr.msk.f32.gmra.mrb[2].mxu0 %vm94_vm1, %v80_v7  ;;  %1153 = vmatprep.subr.bf16.mxu1 %v1152_v15  ;;  %v91_v21 = vld [vmem:[%s1565_s1 + $0x70] sm:$0xff]  ;;  %v92_v22 = vld [vmem:[%s1565_s1 + $0x78] sm:$0xff]  ;;  %v59_v23 = vld [vmem:[%s1564_s0] sm:$0xff] }
  0x2e   :  { %1035 = vmatprep.mubr.msk.f32.mxu0 %vm94_vm1, %v81_v8  ;;  %1155 = vmatpush3.bf16.msra.mxu1 %v1152_v15  ;;  %v60_v24 = vld [vmem:[%s1564_s0 + $0x8] sm:$0xff]  ;;  %v61_v25 = vld [vmem:[%s1564_s0 + $0x10] sm:$0xff]  ;;  %v62_v26 = vld [vmem:[%s1564_s0 + $0x18] sm:$0xff]  ;;  %p1267_p5 = por %p1266_p4, %p1265_p3 }
  0x2f   :  { %v63_v27 = vld [vmem:[%s1564_s0 + $0x20] sm:$0xff]  ;;  %v64_v28 = vld [vmem:[%s1564_s0 + $0x28] sm:$0xff]  ;;  %v65_v29 = vld [vmem:[%s1564_s0 + $0x30] sm:$0xff] }
  0x30   :  { %v66_v30 = vld [vmem:[%s1564_s0 + $0x38] sm:$0xff]  ;;  %v67_v31 = vld [vmem:[%s1564_s0 + $0x40] sm:$0xff]  ;;  %v68_v32 = vld [vmem:[%s1564_s0 + $0x48] sm:$0xff]  ;;  %p1268_p6 = pnand %p1267_p5, %p1261_p2 }
  0x31   :  { %1036 = vmatmul.mubr.msk.f32.gmra.mrb[4].mxu0 %vm94_vm1, %v82_v9  ;;  %v69_v33 = vld [vmem:[%s1564_s0 + $0x50] sm:$0xff]  ;;  %v70_v34 = vld [vmem:[%s1564_s0 + $0x58] sm:$0xff]  ;;  %v71_v35 = vld [vmem:[%s1564_s0 + $0x60] sm:$0xff] }
  0x32   :  { %1038 = vmatprep.mubr.msk.f32.mxu0 %vm94_vm1, %v83_v10  ;;  %v72_v36 = vld [vmem:[%s1564_s0 + $0x68] sm:$0xff]  ;;  %v73_v37 = vld [vmem:[%s1564_s0 + $0x70] sm:$0xff]  ;;  %v74_v38 = vld [vmem:[%s1564_s0 + $0x78] sm:$0xff] }
  0x33   :  { %v527_v39 = vld [vmem:[#allocation6 + $0x10] sm:$0xff]  ;;  %v528_v40 = vld [vmem:[#allocation6 + $0x18] sm:$0xff]  ;;  %v920_v42 = vld [vmem:[%s1567_s3] ss:$0 sm:$0xff] }
  0x34   :  { %v1156_v41 = vpack.c.bf16 %v528_v40, %v527_v39  ;;  %vm1518_vm5 = vmpackc.low %vm536_vm3, %vm536_vm3 }
  0x35   :  { %1039 = vmatmul.mubr.msk.f32.gmra.mrb[6].mxu0 %vm94_vm1, %v84_v12 }
  0x36   :  { %1041 = vmatprep.mubr.msk.f32.mxu0 %vm94_vm1, %v85_v14  ;;  %1157 = vmatprep.subr.bf16.mxu1 %v1156_v41 }
  0x37   :  { %1159 = vmatpush3.bf16.msra.mxu1 %v1156_v41 }
  0x39   :  { %1042 = vmatmul.mubr.msk.f32.gmra.mrb[8].mxu0 %vm94_vm1, %v86_v16 }
  0x3a   :  { %1044 = vmatprep.mubr.msk.f32.mxu0 %vm94_vm1, %v87_v17 }
  0x3d   :  { %1045 = vmatmul.mubr.msk.f32.gmra.mrb[10].mxu0 %vm94_vm1, %v88_v18 }
  0x3e   :  { %1047 = vmatprep.mubr.msk.f32.mxu0 %vm94_vm1, %v89_v19 }
  0x41   :  { %1048 = vmatmul.mubr.msk.f32.gmra.mrb[12].mxu0 %vm94_vm1, %v90_v20 }
  0x42   :  { %1050 = vmatprep.mubr.msk.f32.mxu0 %vm94_vm1, %v91_v21 }
  0x45   :  { %1051 = vmatmul.mubr.msk.f32.gmra.mrb[14].mxu0 %vm94_vm1, %v92_v22 }
  0x46   :  { %1057 = vmatprep.mubr.msk.f32.mxu0 %vm292_vm2, %v59_v23 }
  0x49   :  { %1058 = vmatmul.mubr.msk.f32.vlgmr.msra.gmra.mrb[0].mxu0 %vm292_vm2, %v60_v24 }
  0x4a   :  { %1060 = vmatprep.mubr.msk.f32.mxu0 %vm292_vm2, %v61_v25 }
  0x4d   :  { %1061 = vmatmul.mubr.msk.f32.gmra.mrb[2].mxu0 %vm292_vm2, %v62_v26 }
  0x4e   :  { %1063 = vmatprep.mubr.msk.f32.mxu0 %vm292_vm2, %v63_v27  ;;  %v1292_v27 = vmov 0.0|0.0  }
  0x4f   :  { %1160 = vmatprep.subr.bf16.mxu1 %v1292_v27 }
  0x51   :  { %1064 = vmatmul.mubr.msk.f32.gmra.mrb[4].mxu0 %vm292_vm2, %v64_v28  ;;  %v1294_v28 = vmov 0.0  }
  0x52   :  { %1066 = vmatprep.mubr.msk.f32.mxu0 %vm292_vm2, %v65_v29  ;;  %v921_v29 = vld [vmem:[%s1569_s5] ss:$0 sm:$0xff] }
  0x55   :  { %1067 = vmatmul.mubr.msk.f32.gmra.mrb[6].mxu0 %vm292_vm2, %v66_v30 }
  0x56   :  { %1069 = vmatprep.mubr.msk.f32.mxu0 %vm292_vm2, %v67_v31 }
  0x59   :  { %1070 = vmatmul.mubr.msk.f32.gmra.mrb[8].mxu0 %vm292_vm2, %v68_v32 }
  0x5a   :  { %1072 = vmatprep.mubr.msk.f32.mxu0 %vm292_vm2, %v69_v33 }
  0x5d   :  { %1073 = vmatmul.mubr.msk.f32.gmra.mrb[10].mxu0 %vm292_vm2, %v70_v34 }
  0x5e   :  { %1075 = vmatprep.mubr.msk.f32.mxu0 %vm292_vm2, %v71_v35 }
  0x61   :  { %1076 = vmatmul.mubr.msk.f32.gmra.mrb[12].mxu0 %vm292_vm2, %v72_v36 }
  0x62   :  { %1078 = vmatprep.mubr.msk.f32.mxu0 %vm292_vm2, %v73_v37 }
  0x65   :  { %1079 = vmatmul.mubr.msk.f32.gmra.mrb[14].mxu0 %vm292_vm2, %v74_v38 }
 0x11c   :  { %v1059_v43 = vpop.f32.mrb[0].mxu0 }
 0x11d   :  { %v494_v44 = vadd.f32 %v1059_v43, %v920_v42  ;;  %v407_v45 = vpop.f32.mrb[1].mxu0 }
 0x11e   :  { %v493_v46 = vadd.f32 %v920_v42, %v407_v45 }
 0x11f   :  { %v510_v49 = vmax.f32 %v494_v44, 0.0 }
 0x120   :  { %v509_v47 = vmax.f32 %v493_v46, 0.0  ;;  %v1062_v48 = vpop.f32.mrb[2].mxu0 }
 0x121   :  { %v496_v50 = vadd.f32 %v1062_v48, %v920_v42  ;;  %v417_v51 = vpop.f32.mrb[3].mxu0 }
 0x122   :  { %v495_v52 = vadd.f32 %v920_v42, %v417_v51  ;;  %1089 = vmatprep.mubr.msk.f32.mxu1 %vm536_vm3, %v509_v47 }
 0x123   :  { %1090 = vmatmul.mubr.msk.f32.vlgmr.msra.gmra.mrb[0].mxu1 %vm536_vm3, %v510_v49  ;;  %v512_v55 = vmax.f32 %v496_v50, 0.0 }
 0x124   :  { %v511_v53 = vmax.f32 %v495_v52, 0.0  ;;  %v1065_v54 = vpop.f32.mrb[4].mxu0 }
 0x125   :  { %v498_v56 = vadd.f32 %v1065_v54, %v920_v42  ;;  %v427_v57 = vpop.f32.mrb[5].mxu0 }
 0x126   :  { %v497_v58 = vadd.f32 %v920_v42, %v427_v57  ;;  %1092 = vmatprep.mubr.msk.f32.mxu1 %vm536_vm3, %v511_v53 }
 0x127   :  { %1093 = vmatmul.mubr.msk.f32.gmra.mrb[2].mxu1 %vm536_vm3, %v512_v55  ;;  %v514_v61 = vmax.f32 %v498_v56, 0.0 }
 0x128   :  { %v513_v59 = vmax.f32 %v497_v58, 0.0  ;;  %v1068_v60 = vpop.f32.mrb[6].mxu0 }
 0x129   :  { %v500_v62 = vadd.f32 %v1068_v60, %v920_v42  ;;  %v437_v63 = vpop.f32.mrb[7].mxu0 }
 0x12a   :  { %v499_v0 = vadd.f32 %v920_v42, %v437_v63  ;;  %1095 = vmatprep.mubr.msk.f32.mxu1 %vm536_vm3, %v513_v59 }
 0x12b   :  { %1096 = vmatmul.mubr.msk.f32.gmra.mrb[4].mxu1 %vm536_vm3, %v514_v61  ;;  %v516_v3 = vmax.f32 %v500_v62, 0.0 }
 0x12c   :  { %v515_v1 = vmax.f32 %v499_v0, 0.0  ;;  %v1071_v2 = vpop.f32.mrb[8].mxu0 }
 0x12d   :  { %v502_v4 = vadd.f32 %v1071_v2, %v920_v42  ;;  %v447_v5 = vpop.f32.mrb[9].mxu0 }
 0x12e   :  { %v501_v6 = vadd.f32 %v920_v42, %v447_v5  ;;  %1098 = vmatprep.mubr.msk.f32.mxu1 %vm536_vm3, %v515_v1 }
 0x12f   :  { %1099 = vmatmul.mubr.msk.f32.gmra.mrb[6].mxu1 %vm536_vm3, %v516_v3  ;;  %v518_v9 = vmax.f32 %v502_v4, 0.0 }
 0x130   :  { %v517_v7 = vmax.f32 %v501_v6, 0.0  ;;  %v1074_v8 = vpop.f32.mrb[10].mxu0 }
 0x131   :  { %v504_v10 = vadd.f32 %v1074_v8, %v920_v42  ;;  %v457_v11 = vpop.f32.mrb[11].mxu0 }
 0x132   :  { %v503_v12 = vadd.f32 %v920_v42, %v457_v11  ;;  %1101 = vmatprep.mubr.msk.f32.mxu1 %vm536_vm3, %v517_v7 }
 0x133   :  { %1102 = vmatmul.mubr.msk.f32.gmra.mrb[8].mxu1 %vm536_vm3, %v518_v9  ;;  %v520_v15 = vmax.f32 %v504_v10, 0.0 }
 0x134   :  { %v519_v13 = vmax.f32 %v503_v12, 0.0  ;;  %v1077_v14 = vpop.f32.mrb[12].mxu0 }
 0x135   :  { %v506_v16 = vadd.f32 %v1077_v14, %v920_v42  ;;  %v467_v17 = vpop.f32.mrb[13].mxu0 }
 0x136   :  { %v505_v18 = vadd.f32 %v920_v42, %v467_v17  ;;  %1104 = vmatprep.mubr.msk.f32.mxu1 %vm536_vm3, %v519_v13 }
 0x137   :  { %1105 = vmatmul.mubr.msk.f32.gmra.mrb[10].mxu1 %vm536_vm3, %v520_v15  ;;  %v522_v21 = vmax.f32 %v506_v16, 0.0 }
 0x138   :  { %v521_v19 = vmax.f32 %v505_v18, 0.0  ;;  %v1080_v20 = vpop.f32.mrb[14].mxu0 }
 0x139   :  { %v508_v22 = vadd.f32 %v1080_v20, %v920_v42  ;;  %v477_v23 = vpop.f32.mrb[15].mxu0 }
 0x13a   :  { %v507_v24 = vadd.f32 %v920_v42, %v477_v23  ;;  %1107 = vmatprep.mubr.msk.f32.mxu1 %vm536_vm3, %v521_v19  ;;  %v746_v23 = vld [vmem:[%s1570_s6] sm:$0x1] }
 0x13b   :  { %1108 = vmatmul.mubr.msk.f32.gmra.mrb[12].mxu1 %vm536_vm3, %v522_v21  ;;  %v524_v26 = vmax.f32 %v508_v22, 0.0 }
 0x13c   :  { %v523_v25 = vmax.f32 %v507_v24, 0.0  ;;  %v748_v24 = vstv %s1571_s7 }
 0x13e   :  { %1110 = vmatprep.mubr.msk.f32.mxu1 %vm536_vm3, %v523_v25 }
 0x13f   :  { %1111 = vmatmul.mubr.msk.f32.gmra.mrb[14].mxu1 %vm536_vm3, %v524_v26 }
 0x140   :  { %1145 = vmatprep.mubr.msk.f32.mxu1 %vm1293_vm4, %v1294_v28 }
 0x1f6   :  { %v1091_v30 = vpop.f32.mrb[0].mxu1 }
 0x1f7   :  { %v657_v31 = vadd.f32 %v1091_v30, %v921_v29  ;;  %v651_v32 = vpop.f32.mrb[1].mxu1 }
 0x1f8   :  { %v652_v33 = vadd.f32 %v921_v29, %v651_v32 }
 0x1f9   :  { %v731_v34 = vmax.f32 %v657_v31, 0.0 }
 0x1fa   :  { %v730_v35 = vmax.f32 %v652_v33, 0.0  ;;  %v1094_v36 = vpop.f32.mrb[2].mxu1 }
 0x1fb   :  { %v667_v37 = vadd.f32 %v1094_v36, %v921_v29  ;;  %v661_v38 = vpop.f32.mrb[3].mxu1 }
 0x1fc   :  { %v1161_v40 = vpack.c.bf16 %v731_v34, %v730_v35  ;;  %v662_v41 = vadd.f32 %v921_v29, %v661_v38 }
 0x1fd   :  { %v733_v42 = vmax.f32 %v667_v37, 0.0 }
 0x1fe   :  { %v732_v43 = vmax.f32 %v662_v41, 0.0  ;;  %v1097_v44 = vpop.f32.mrb[4].mxu1  ;;  %1163 = vmatpush3.bf16.xpose.msk.msra.mxu1 %vm1518_vm5, %v1161_v40 }
 0x1ff   :  { %v677_v45 = vadd.f32 %v1097_v44, %v921_v29  ;;  %v671_v46 = vpop.f32.mrb[5].mxu1  ;;  %1164 = vmatprep.subr.bf16.mxu1 %v1292_v27 }
 0x200   :  { %v1165_v47 = vpack.c.bf16 %v733_v42, %v732_v43  ;;  %v672_v48 = vadd.f32 %v921_v29, %v671_v46 }
 0x201   :  { %v735_v49 = vmax.f32 %v677_v45, 0.0 }
 0x202   :  { %v734_v50 = vmax.f32 %v672_v48, 0.0  ;;  %v1100_v51 = vpop.f32.mrb[6].mxu1 }
 0x203   :  { %v687_v52 = vadd.f32 %v1100_v51, %v921_v29  ;;  %v681_v53 = vpop.f32.mrb[7].mxu1 }
 0x204   :  { %v1169_v54 = vpack.c.bf16 %v735_v49, %v734_v50  ;;  %v682_v55 = vadd.f32 %v921_v29, %v681_v53 }
 0x205   :  { %v737_v56 = vmax.f32 %v687_v52, 0.0 }
 0x206   :  { %v736_v57 = vmax.f32 %v682_v55, 0.0  ;;  %v1103_v58 = vpop.f32.mrb[8].mxu1  ;;  %1167 = vmatpush3.bf16.xpose.msk.msra.mxu1 %vm1518_vm5, %v1165_v47 }
 0x207   :  { %v697_v59 = vadd.f32 %v1103_v58, %v921_v29  ;;  %v691_v60 = vpop.f32.mrb[9].mxu1  ;;  %1168 = vmatprep.subr.bf16.mxu1 %v1292_v27 }
 0x208   :  { %v1173_v61 = vpack.c.bf16 %v737_v56, %v736_v57  ;;  %v692_v62 = vadd.f32 %v921_v29, %v691_v60 }
 0x209   :  { %v739_v63 = vmax.f32 %v697_v59, 0.0 }
 0x20a   :  { %v738_v0 = vmax.f32 %v692_v62, 0.0  ;;  %v1106_v1 = vpop.f32.mrb[10].mxu1 }
 0x20b   :  { %v707_v2 = vadd.f32 %v1106_v1, %v921_v29  ;;  %v701_v3 = vpop.f32.mrb[11].mxu1 }
 0x20c   :  { %v1177_v4 = vpack.c.bf16 %v739_v63, %v738_v0  ;;  %v702_v5 = vadd.f32 %v921_v29, %v701_v3 }
 0x20d   :  { %v741_v6 = vmax.f32 %v707_v2, 0.0 }
 0x20e   :  { %v740_v7 = vmax.f32 %v702_v5, 0.0  ;;  %v1109_v8 = vpop.f32.mrb[12].mxu1  ;;  %1171 = vmatpush3.bf16.xpose.msk.msra.mxu1 %vm1518_vm5, %v1169_v54 }
 0x20f   :  { %v717_v9 = vadd.f32 %v1109_v8, %v921_v29  ;;  %v711_v10 = vpop.f32.mrb[13].mxu1  ;;  %1172 = vmatprep.subr.bf16.mxu1 %v1292_v27 }
 0x210   :  { %v1181_v11 = vpack.c.bf16 %v741_v6, %v740_v7  ;;  %v712_v12 = vadd.f32 %v921_v29, %v711_v10 }
 0x211   :  { %v743_v13 = vmax.f32 %v717_v9, 0.0 }
 0x212   :  { %v742_v14 = vmax.f32 %v712_v12, 0.0  ;;  %v1112_v15 = vpop.f32.mrb[14].mxu1 }
 0x213   :  { %v727_v16 = vadd.f32 %v1112_v15, %v921_v29  ;;  %v721_v17 = vpop.f32.mrb[15].mxu1 }
 0x214   :  { %v1185_v18 = vpack.c.bf16 %v743_v13, %v742_v14  ;;  %v722_v19 = vadd.f32 %v921_v29, %v721_v17 }
 0x215   :  { %v745_v20 = vmax.f32 %v727_v16, 0.0 }
 0x216   :  { %v744_v21 = vmax.f32 %v722_v19, 0.0  ;;  %1175 = vmatpush3.bf16.xpose.msk.msra.mxu1 %vm1518_vm5, %v1173_v61 }
 0x217   :  { %1176 = vmatprep.subr.bf16.mxu1 %v1292_v27 }
 0x218   :  { %v1189_v22 = vpack.c.bf16 %v745_v20, %v744_v21 }
 0x21e   :  { %1179 = vmatpush3.bf16.xpose.msk.msra.mxu1 %vm1518_vm5, %v1177_v4 }
 0x21f   :  { %1180 = vmatprep.subr.bf16.mxu1 %v1292_v27 }
 0x226   :  { %1183 = vmatpush3.bf16.xpose.msk.msra.mxu1 %vm1518_vm5, %v1181_v11 }
 0x227   :  { %1184 = vmatprep.subr.bf16.mxu1 %v1292_v27 }
 0x22e   :  { %1187 = vmatpush3.bf16.xpose.msk.msra.mxu1 %vm1518_vm5, %v1185_v18 }
 0x22f   :  { %1188 = vmatprep.subr.bf16.mxu1 %v1292_v27 }
 0x236   :  { %1191 = vmatpush3.bf16.xpose.msk.msra.mxu1 %vm1518_vm5, %v1189_v22 }
 0x23d   :  { %1146 = vmatmul.mubr.msk.f32.vlgmr.msra.gmra.mrb[16].mxu1 %vm536_vm3, %v746_v23 }
 0x310   :  { %v866_v25 = vpop.f32.mrb[16].mxu1 }
 0x311   :  { %v867_v26 = vadd.f32 %v866_v25, %v748_v24  ;;  %v1147_v28 = vpop.f32.mrb[17].mxu1 }
 0x313   :  { %870 = vst [vmem:[#allocation8] sm:$0x1] %v867_v26 }
 0x314   :  { %1271 = shalt.err (!%p1268_p6)
}
 0x315   :  { %s1272_s30 = scalar_lea.hbm %s1572_s8, 16 }
 0x316   :  { %p1273_p7 = scmp.ne.s32.totalorder %s1572_s8, %s1272_s30  ;;  %p1276_p8 = scmp.lt.u32.totalorder %s1272_s30, %s1572_s8 }
 0x318   :  { %p1278_p9 = pnand %p1276_p8, %p1273_p7 }
 0x31a   :  { %1281 = shalt.err (!%p1278_p9)
}
 0x31b   :  { %880 = dma.vmem_to_hbm [thread:$0]  %s878_s27, 16, %s1572_s8, [#allocation5]  }
 0x31c   :  { %1286 = dma.done.wait [#allocation5], 16  }
 0x31d   :  { %1287 = vsyncadd [#allocation5], 4294967280 }
 0x31e   :  { %884 = vsyncpa [#allocation4], 1 }
 0x31f   :  { %885 = vsyncpa [#allocation7], 1 }
 0x320   :  { %886 = vsyncpa [#allocation5], 1 }

</bundles_post_ra>
